<compile_context>
chip_gen: v5e
topology: v5e:2x2
jax: 0.10.0
libtpu: 0.0.40
codegen_flags: <defaults>
</compile_context>

<pallas_src>
import math
from functools import lru_cache

import jax
import jax.numpy as jnp
from jax import lax
from jax.experimental import pallas as pl
from jax.experimental.pallas import tpu as pltpu


# -----------------------------------------------------------------------------
# Generation-aware VMEM sizing
# -----------------------------------------------------------------------------
@lru_cache(maxsize=1)
def _vmem_params():
    """Return (vmem_limit_bytes, per-step tile-budget bytes) for this chip."""
    cap = None
    try:
        cap = getattr(pltpu.get_tpu_info(), "vmem_capacity_bytes", None)
    except Exception:
        cap = None
    if not cap:
        cap = 64 * 1024 * 1024            # conservative default (v7x per-core)
    limit = (int(cap) * 3) // 4           # ~48 MiB on v7x, ~96 MiB on v5e/v6e
    budget = (limit * 2) // 3             # headroom for Mosaic scratch / spill
    return int(limit), int(budget)


# Minimum second-minor (sublane) multiple required when tiling, per itemsize.
_SUBLANE_MULT = {4: 8, 2: 16, 1: 32}


# -----------------------------------------------------------------------------
# Tile selection (accounts for DMA blocks AND f32 softmax intermediates)
# -----------------------------------------------------------------------------
def _mask_step_bytes(mask_infos, G, TQ, S):
    total = 0
    for (Bm, Hm, Sq, Sk), itemsize in mask_infos:
        lead = G if Hm > 1 else 1
        qb = TQ if Sq == S else 1
        total += lead * qb * Sk * itemsize
    return total


def _tile_bytes(G, TQ, S, D, in_b, out_b, attn_b, emit_attn, mask_infos):
    # DMA'd blocks (double-buffered by the Pallas pipeline).
    dma = (G * TQ * D * in_b              # q tile
           + 2 * G * S * D * in_b         # k, v tiles (resident across query tiles)
           + G * TQ * D * out_b           # context-out tile
           + _mask_step_bytes(mask_infos, G, TQ, S))
    if emit_attn:
        dma += G * TQ * S * attn_b        # attention-prob tile
    # In-kernel f32 softmax intermediates (scores, exp, probs) + cast copy.
    interm = (3 * 4 + in_b) * G * TQ * S
    return 2 * dma + interm


def _choose_tiles(BH, H, S, D, in_b, out_b, attn_b, emit_attn,
                  mask_infos, group_mod, tq_mult, budget):
    """Pick (G heads per step, TQ query tile) fitting the VMEM budget.

    G is a divisor of `group_mod` (H when a batch/head-varying mask must stay
    aligned with head groups, else B*H), preferring BH//G >= 2 so both v7x
    TensorCores get work.
    """
    divs = [d for d in range(group_mod, 0, -1) if group_mod % d == 0]
    pref = [d for d in divs if BH // d >= 2] or divs
    tq_cands = [S] + [t for t in (2048, 1024, 512, 256, 128, 64, 32, 16, 8)
                      if t < S and S % t == 0 and t % tq_mult == 0]
    for TQ in tq_cands:
        for G in pref:
            if _tile_bytes(G, TQ, S, D, in_b, out_b, attn_b,
                           emit_attn, mask_infos) <= budget:
                return G, TQ
    return 1, tq_cands[-1]


# -----------------------------------------------------------------------------
# Mask normalization (keep natural broadcast shape; never replicate B*H times)
# -----------------------------------------------------------------------------
def _norm_mask_4d(mask, B, H, S, name):
    m = jnp.asarray(mask)
    if m.ndim > 4:
        raise ValueError(f"{name} rank {m.ndim} > 4 not supported")
    m = m.reshape((1,) * (4 - m.ndim) + m.shape)
    Bm, Hm, Sq, Sk = (int(d) for d in m.shape)
    if Bm not in (1, B) or Hm not in (1, H) or Sq not in (1, S) or Sk not in (1, S):
        raise ValueError(
            f"{name} shape {tuple(m.shape)} does not broadcast against "
            f"(B={B}, H={H}, S={S}, S={S})")
    return m, (Bm, Hm, Sq, Sk)


def _norm_attention_mask(mask, B, H, S):
    """-> int8 (Bm*Hm, Sq, Sk); 0 = masked, 1 = keep (torch masked_fill(mask==0))."""
    m, dims = _norm_mask_4d(mask, B, H, S, "attention_mask")
    Bm, Hm, Sq, Sk = dims
    m8 = (m != 0).astype(jnp.int8).reshape(Bm * Hm, Sq, Sk)
    return m8, dims


def _norm_head_mask(mask, B, H, S):
    """-> f32 (Bm*Hm, Sq, Sk) multiplicative mask (values preserved)."""
    m, dims = _norm_mask_4d(mask, B, H, S, "head_mask")
    Bm, Hm, Sq, Sk = dims
    mf = m.astype(jnp.float32).reshape(Bm * Hm, Sq, Sk)
    return mf, dims


def _mask_block_spec(dims, G, TQ, S, GH):
    """BlockSpec for a (Bm*Hm, Sq, Sk) mask shared across the (g, t) grid."""
    Bm, Hm, Sq, Sk = dims
    lead_blk = G if Hm > 1 else 1
    q_blk = TQ if Sq == S else 1

    def idx(g, t, _Bm=Bm, _Hm=Hm, _Sq=Sq, _S=S, _GH=GH):
        if _Hm > 1 and _Bm > 1:
            lead = g                      # mask stored per flattened (b, h)
        elif _Hm > 1:
            lead = g % _GH                # per-head mask shared across batch
        elif _Bm > 1:
            lead = g // _GH               # per-batch mask shared across heads
        else:
            lead = 0
        return (lead, t if _Sq == _S else 0, 0)

    return pl.BlockSpec((lead_blk, q_blk, Sk), idx)


# -----------------------------------------------------------------------------
# Kernel factory
# -----------------------------------------------------------------------------
def _make_kernel(use_amask, use_hmask, emit_attn, head_dim):
    scale = 1.0 / math.sqrt(head_dim)

    def kernel(*refs):
        it = iter(refs)
        q_ref = next(it)
        k_ref = next(it)
        v_ref = next(it)
        am_ref = next(it) if use_amask else None
        hm_ref = next(it) if use_hmask else None
        out_ref = next(it)
        attn_ref = next(it) if emit_attn else None

        q = q_ref[...]                       # (G, TQ, D), input dtype
        q = q * jnp.asarray(scale, q.dtype)  # fold 1/sqrt(D) into the small q tile
        k = k_ref[...]                       # (G, S, D)
        v = v_ref[...]                       # (G, S, D)

        # scores = q @ k^T: contract head dim directly (no k transpose), f32 acc.
        s = lax.dot_general(
            q, k,
            dimension_numbers=(((2,), (2,)), ((0,), (0,))),
            preferred_element_type=jnp.float32)          # (G, TQ, S)

        if use_amask:
            # masked_fill(mask == 0, -inf); large finite negative so a fully
            # masked row gives a uniform row instead of NaN.
            s = jnp.where(am_ref[...] == 0, jnp.float32(-1e30), s)

        # Numerically stable softmax in f32 (matches torch F.softmax). Exact
        # reciprocal of the tiny (G, TQ, 1) denominator (probs are returned).
        m = jnp.max(s, axis=-1, keepdims=True)
        p = jnp.exp(s - m)
        denom = jnp.sum(p, axis=-1, keepdims=True)
        probs = p * (jnp.float32(1.0) / denom)

        # attn_dropout is 0.0 in eval mode -> no-op.
        if use_hmask:
            probs = probs * hm_ref[...].astype(jnp.float32)

        # Single cast of the largest in-kernel tensor, reused for both outputs.
        probs_v = probs.astype(v.dtype)
        if emit_attn:
            attn_ref[...] = (probs_v if attn_ref.dtype == v.dtype
                             else probs.astype(attn_ref.dtype))

        out_ref[...] = lax.dot_general(
            probs_v, v,
            dimension_numbers=(((2,), (1,)), ((0,), (0,))),
            preferred_element_type=jnp.float32).astype(out_ref.dtype)

    return kernel


# -----------------------------------------------------------------------------
# Public wrapper (matches SelfAttention.forward in eval mode)
# -----------------------------------------------------------------------------
def self_attention(q, k, v, attention_mask=None, head_mask=None,
                   return_attn_probs=True):
    B, H, *spatial, D = q.shape
    S = int(math.prod(spatial)) if spatial else 1
    BH = B * H
    dtype = q.dtype                     # keep input dtype (bf16 stays bf16 on MXU)
    out_dtype = dtype
    attn_dtype = dtype                  # torch: attn_float.type_as(attn)

    qf = q.reshape(BH, S, D)
    kf = k.reshape(BH, S, D)
    vf = v.reshape(BH, S, D)

    use_amask = attention_mask is not None
    use_hmask = head_mask is not None
    emit_attn = bool(return_attn_probs)

    in_b = jnp.dtype(dtype).itemsize
    out_b = jnp.dtype(out_dtype).itemsize
    attn_b = jnp.dtype(attn_dtype).itemsize

    mask_infos = []
    am_arr = am_dims = hm_arr = hm_dims = None
    if use_amask:
        am_arr, am_dims = _norm_attention_mask(attention_mask, B, H, S)
        mask_infos.append((am_dims, 1))          # int8
    if use_hmask:
        hm_arr, hm_dims = _norm_head_mask(head_mask, B, H, S)
        mask_infos.append((hm_dims, 4))          # f32

    # Query-tile sublane multiple: input dtype + any mask tiled along queries.
    tq_mult = _SUBLANE_MULT.get(in_b, 8)
    for dims, isz in mask_infos:
        if dims[2] == S:
            tq_mult = max(tq_mult, _SUBLANE_MULT.get(isz, 8))

    # If any mask varies per batch or per head, head groups must stay aligned
    # within a batch (G must divide H).
    group_mod = BH
    if any(dims[0] > 1 or dims[1] > 1 for dims, _ in mask_infos):
        group_mod = H

    vmem_limit, tile_budget = _vmem_params()
    G, TQ = _choose_tiles(BH, H, S, D, in_b, out_b, attn_b, emit_attn,
                          mask_infos, group_mod, tq_mult, tile_budget)
    GH = max(H // G, 1) if group_mod == H else 1

    grid = (BH // G, S // TQ)
    q_spec = pl.BlockSpec((G, TQ, D), lambda g, t: (g, t, 0))
    kv_spec = pl.BlockSpec((G, S, D), lambda g, t: (g, 0, 0))   # resident across t
    o_spec = pl.BlockSpec((G, TQ, D), lambda g, t: (g, t, 0))
    a_spec = pl.BlockSpec((G, TQ, S), lambda g, t: (g, t, 0))

    in_specs = [q_spec, kv_spec, kv_spec]
    inputs = [qf, kf, vf]
    if use_amask:
        in_specs.append(_mask_block_spec(am_dims, G, TQ, S, GH))
        inputs.append(am_arr)
    if use_hmask:
        in_specs.append(_mask_block_spec(hm_dims, G, TQ, S, GH))
        inputs.append(hm_arr)

    if emit_attn:
        out_shape = (jax.ShapeDtypeStruct((BH, S, D), out_dtype),
                     jax.ShapeDtypeStruct((BH, S, S), attn_dtype))
        out_specs = [o_spec, a_spec]
    else:
        out_shape = jax.ShapeDtypeStruct((BH, S, D), out_dtype)
        out_specs = o_spec

    kernel = _make_kernel(use_amask, use_hmask, emit_attn, D)

    result = pl.pallas_call(
        kernel,
        out_shape=out_shape,
        grid_spec=pltpu.PrefetchScalarGridSpec(
            num_scalar_prefetch=0,
            grid=grid,
            in_specs=in_specs,
            out_specs=out_specs,
        ),
        compiler_params=pltpu.CompilerParams(
            # Megacore shards heads only; splitting the query axis would make
            # both cores re-stream the same (G, S, D) K/V block.
            dimension_semantics=("parallel", "arbitrary"),
            vmem_limit_bytes=vmem_limit),
    )(*inputs)

    if emit_attn:
        out, attn = result
        return out.reshape(B, H, *spatial, D), attn.reshape(B, H, S, S)
    return result.reshape(B, H, *spatial, D)


# -----------------------------------------------------------------------------
# Pure-JAX reference (mirrors the torch module)
# -----------------------------------------------------------------------------
def _reference(q, k, v, attention_mask=None, head_mask=None):
    B, H, *spatial, D = q.shape
    S = int(math.prod(spatial))
    qf = q.reshape(B, H, S, D).astype(jnp.float32)
    kf = k.reshape(B, H, S, D).astype(jnp.float32)
    vf = v.reshape(B, H, S, D).astype(jnp.float32)
    s = jnp.einsum('bhqd,bhkd->bhqk', qf, kf,
                   precision=lax.Precision.HIGHEST) / jnp.sqrt(jnp.float32(D))
    if attention_mask is not None:
        s = jnp.where(jnp.asarray(attention_mask) == 0, -jnp.inf, s)
    p = jax.nn.softmax(s, axis=-1)
    if head_mask is not None:
        p = p * jnp.asarray(head_mask, jnp.float32)
    o = jnp.einsum('bhqk,bhkd->bhqd', p, vf, precision=lax.Precision.HIGHEST)
    return o.reshape(B, H, *spatial, D), p


if __name__ == "__main__":
    # Small shapes consistent with the module: (B, H, h, w, D) -> seq = h*w.
    B, H, h, w, D = 2, 2, 4, 4, 32
    S = h * w
    key = jax.random.PRNGKey(0)
    kq, kk, kv_ = jax.random.split(key, 3)
    q = jax.random.normal(kq, (B, H, h, w, D), jnp.float32)
    k = jax.random.normal(kk, (B, H, h, w, D), jnp.float32)
    v = jax.random.normal(kv_, (B, H, h, w, D), jnp.float32)

    TOL = dict(atol=1e-3, rtol=1e-3)

    # 1) Fast (mask-free) path.
    out, attn = self_attention(q, k, v)
    jax.block_until_ready((out, attn))
    ref_out, ref_attn = _reference(q, k, v)
    assert out.shape == (B, H, h, w, D)
    assert attn.shape == (B, H, S, S)
    assert jnp.allclose(out, ref_out, **TOL)
    assert jnp.allclose(attn, ref_attn, **TOL)

    # 2) No-attn-probs variant (skips the (BH,S,S) HBM writeback entirely).
    out_only = self_attention(q, k, v, return_attn_probs=False)
    jax.block_until_ready(out_only)
    assert jnp.allclose(out_only, ref_out, **TOL)

    # 3) Full (S,S) causal attention mask + per-head scalar head mask
    #    (head mask streams only G scalars per step, never S*S).
    amask = jnp.tril(jnp.ones((S, S), jnp.float32))[None, None]
    hmask = jnp.array([1.0, 0.5], jnp.float32).reshape(1, H, 1, 1)
    out_m, attn_m = self_attention(q, k, v, attention_mask=amask, head_mask=hmask)
    jax.block_until_ready((out_m, attn_m))
    ref_out_m, ref_attn_m = _reference(q, k, v, amask, hmask)
    assert jnp.allclose(out_m, ref_out_m, **TOL)
    assert jnp.allclose(attn_m, ref_attn_m, **TOL)

    # 4) (B,1,1,S) key-padding mask (streams S int8 per batch, not S*S f32).
    pad = jnp.ones((B, 1, 1, S), jnp.float32).at[0, :, :, -3:].set(0.0)
    out_p, attn_p = self_attention(q, k, v, attention_mask=pad)
    jax.block_until_ready((out_p, attn_p))
    ref_out_p, ref_attn_p = _reference(q, k, v, pad)
    assert jnp.allclose(out_p, ref_out_p, **TOL)
    assert jnp.allclose(attn_p, ref_attn_p, **TOL)

    print("KERNEL_OK")
</pallas_src>

<mosaic_0001>
module attributes {stable_mosaic.version = 11 : i64} {
  func.func @kernel(%arg0: i32, %arg1: i32, %arg2: memref<2x16x32xf32, #tpu.memory_space<vmem>>, %arg3: memref<2x16x32xf32, #tpu.memory_space<vmem>>, %arg4: memref<2x16x32xf32, #tpu.memory_space<vmem>>, %arg5: memref<2x16x32xf32, #tpu.memory_space<vmem>>, %arg6: memref<2x16x16xf32, #tpu.memory_space<vmem>>) attributes {dimension_semantics = [#tpu.dimension_semantics<parallel>, #tpu.dimension_semantics<arbitrary>], iteration_bounds = array<i64: 2, 1>, scalar_prefetch = 0 : i64, scratch_operands = 0 : i64, tpu.core_type = #tpu.core_type<tc>, window_params = [{transform_indices = @transform_0, window_bounds = array<i64: 2, 16, 32>}, {transform_indices = @transform_1, window_bounds = array<i64: 2, 16, 32>}, {transform_indices = @transform_2, window_bounds = array<i64: 2, 16, 32>}, {transform_indices = @transform_3, window_bounds = array<i64: 2, 16, 32>}, {transform_indices = @transform_4, window_bounds = array<i64: 2, 16, 16>}]} {
    %c0 = arith.constant 0 : index
    %c0_0 = arith.constant 0 : index
    %c0_1 = arith.constant 0 : index
    %0 = vector.load %arg2[%c0, %c0_0, %c0_1] : memref<2x16x32xf32, #tpu.memory_space<vmem>>, vector<2x16x32xf32>
    %cst = arith.constant 0.176776692 : f32
    %1 = vector.broadcast %cst : f32 to vector<2x16x32xf32>
    %2 = arith.mulf %0, %1 : vector<2x16x32xf32>
    %c0_2 = arith.constant 0 : index
    %c0_3 = arith.constant 0 : index
    %c0_4 = arith.constant 0 : index
    %3 = vector.load %arg3[%c0_2, %c0_3, %c0_4] : memref<2x16x32xf32, #tpu.memory_space<vmem>>, vector<2x16x32xf32>
    %c0_5 = arith.constant 0 : index
    %c0_6 = arith.constant 0 : index
    %c0_7 = arith.constant 0 : index
    %4 = vector.load %arg4[%c0_5, %c0_6, %c0_7] : memref<2x16x32xf32, #tpu.memory_space<vmem>>, vector<2x16x32xf32>
    %cst_8 = arith.constant dense<0.000000e+00> : vector<2x16x16xf32>
    %5 = tpu.matmul %2, %3, %cst_8 {dimension_numbers = #tpu.dot_dimension_numbers<[2], [2], [1], [1], [0, 0, 0, 1, 1, 1], [0], [0]>} : vector<2x16x32xf32>, vector<2x16x32xf32>, vector<2x16x16xf32> -> vector<2x16x16xf32>
    %cst_9 = arith.constant dense<0xFF800000> : vector<2x16xf32>
    %6 = vector.multi_reduction <maximumf>, %5, %cst_9 [2] : vector<2x16x16xf32> to vector<2x16xf32>
    %7 = vector.shape_cast %6 : vector<2x16xf32> to vector<2x16x1xf32>
    %8 = vector.broadcast %7 : vector<2x16x1xf32> to vector<2x16x16xf32>
    %9 = arith.subf %5, %8 : vector<2x16x16xf32>
    %10 = math.exp %9 : vector<2x16x16xf32>
    %cst_10 = arith.constant dense<0.000000e+00> : vector<2x16xf32>
    %11 = vector.multi_reduction <add>, %10, %cst_10 [2] : vector<2x16x16xf32> to vector<2x16xf32>
    %12 = vector.shape_cast %11 : vector<2x16xf32> to vector<2x16x1xf32>
    %cst_11 = arith.constant 1.000000e+00 : f32
    %13 = vector.broadcast %cst_11 : f32 to vector<2x16x1xf32>
    %14 = arith.divf %13, %12 : vector<2x16x1xf32>
    %15 = vector.broadcast %14 : vector<2x16x1xf32> to vector<2x16x16xf32>
    %16 = arith.mulf %10, %15 : vector<2x16x16xf32>
    %c0_12 = arith.constant 0 : index
    %c0_13 = arith.constant 0 : index
    %c0_14 = arith.constant 0 : index
    %17 = vector.load %arg6[%c0_12, %c0_13, %c0_14] : memref<2x16x16xf32, #tpu.memory_space<vmem>>, vector<2x16x16xf32>
    tpu.vector_store %arg6[%c0_12, %c0_13, %c0_14], %16 {strides = array<i32>} : memref<2x16x16xf32, #tpu.memory_space<vmem>>, vector<2x16x16xf32>,
    %cst_15 = arith.constant dense<0.000000e+00> : vector<2x16x32xf32>
    %18 = tpu.matmul %16, %4, %cst_15 {dimension_numbers = #tpu.dot_dimension_numbers<[2], [1], [1], [2], [0, 0, 0, 1, 1, 2], [0], [0]>} : vector<2x16x16xf32>, vector<2x16x32xf32>, vector<2x16x32xf32> -> vector<2x16x32xf32>
    %c0_16 = arith.constant 0 : index
    %c0_17 = arith.constant 0 : index
    %c0_18 = arith.constant 0 : index
    %19 = vector.load %arg5[%c0_16, %c0_17, %c0_18] : memref<2x16x32xf32, #tpu.memory_space<vmem>>, vector<2x16x32xf32>
    tpu.vector_store %arg5[%c0_16, %c0_17, %c0_18], %18 {strides = array<i32>} : memref<2x16x32xf32, #tpu.memory_space<vmem>>, vector<2x16x32xf32>,
    return
  }
  func.func @transform_0(%arg0: i32, %arg1: i32) -> (i32, i32, i32) {
    %c0_i32 = arith.constant 0 : i32
    %c0_i32_0 = arith.constant 0 : i32
    return %arg0, %arg1, %c0_i32 : i32, i32, i32
  }
  func.func @transform_1(%arg0: i32, %arg1: i32) -> (i32, i32, i32) {
    %c0_i32 = arith.constant 0 : i32
    %c0_i32_0 = arith.constant 0 : i32
    %c0_i32_1 = arith.constant 0 : i32
    return %arg0, %c0_i32, %c0_i32_0 : i32, i32, i32
  }
  func.func @transform_2(%arg0: i32, %arg1: i32) -> (i32, i32, i32) {
    %c0_i32 = arith.constant 0 : i32
    %c0_i32_0 = arith.constant 0 : i32
    %c0_i32_1 = arith.constant 0 : i32
    return %arg0, %c0_i32, %c0_i32_0 : i32, i32, i32
  }
  func.func @transform_3(%arg0: i32, %arg1: i32) -> (i32, i32, i32) {
    %c0_i32 = arith.constant 0 : i32
    %c0_i32_0 = arith.constant 0 : i32
    return %arg0, %arg1, %c0_i32 : i32, i32, i32
  }
  func.func @transform_4(%arg0: i32, %arg1: i32) -> (i32, i32, i32) {
    %c0_i32 = arith.constant 0 : i32
    %c0_i32_0 = arith.constant 0 : i32
    return %arg0, %arg1, %c0_i32 : i32, i32, i32
  }
}

</mosaic_0001>

<bundles_post_ra>
// kernel: tpu_custom_call.1
= control target key start
LH: loop header
LB: loop body
LE: loop exit
PB: predicated region body
PF: predicated region fallthrough
CT: control target
= control target key end

     0   :  { %s1426_s0 = inlined_call_operand.hbm [shape: f32[4,16,32], index: 0, kind: input, shape index: {}]   ;;  %s1427_s1 = inlined_call_operand.hbm [shape: f32[4,16,32], index: 1, kind: input, shape index: {}]   ;;  %s1428_s2 = inlined_call_operand.hbm [shape: f32[4,16,32], index: 2, kind: input, shape index: {}]   ;;  %s1429_s3 = inlined_call_operand.hbm [shape: f32[4,16,32], index: 3, kind: output, shape index: {0}]   ;;  %s1430_s4 = inlined_call_operand.hbm [shape: f32[4,16,16], index: 4, kind: output, shape index: {1}]  }
   0x1   :  { %1437 = sst [smem:[#allocation21_spill]] %s1427_s1 }
   0x2   :  { %10 = vsyncpa [#allocation3], 0 }
   0x3   :  { %12 = vsyncpa [#allocation3 + $0x1], 0 }
   0x4   :  { %13 = vsyncpa [#allocation6], 0 }
   0x5   :  { %15 = vsyncpa [#allocation6 + $0x1], 0 }
   0x6   :  { %16 = vsyncpa [#allocation4], 0 }
   0x7   :  { %18 = vsyncpa [#allocation4 + $0x1], 0 }
   0x8   :  { %19 = vsyncpa [#allocation10], 0 }
   0x9   :  { %21 = vsyncpa [#allocation10 + $0x1], 0  ;;  %s1195_s15 = smov 0   ;;  %s1197_s16 = smov 0  }
   0xa   :  { %s1199_s17 = smov 0   ;;  %s1201_s18 = smov 0  }
   0xb   :  { %s1203_s19 = smov 0   ;;  %s1205_s20 = smov 0  }
   0xc LB: > { %1438 = sst [smem:[#allocation15_spill]] %s1152_s17  ;;  %s1226_s21 = sadd.s32 4294967295, %s1164_s20   ;;  %s1164_s20 = sphi %s1205_s20, %s27_s20   ;;  %s1160_s19 = sphi %s1203_s19, %s1456_s19   ;;  %s1156_s18 = sphi %s1201_s18, %s1455_s18   ;;  %s1152_s17 = sphi %s1199_s17, %s1454_s17   ;;  %s1148_s16 = sphi %s1197_s16, %s1458_s16   ;;  %s1144_s15 = sphi %s1195_s15, %s1457_s15  }
   0xd   : > { %1439 = sst [smem:[#allocation16_spill]] %s1160_s19  ;;  %s806_s22 = sadd.s32 4294967294, %s1164_s20  }
   0xe   : > { %1440 = sst [smem:[#allocation17_spill]] %s1164_s20  ;;  %s39_s23 = sadd.s32 1, %s1160_s19 }
   0xf   : > { %s48_s24 = sadd.s32 1, %s1152_s17  ;;  %p41_p0 = scmp.ge.s32.totalorder %s39_s23, 2 }
  0x10   : > { %p55_p1 = scmp.ne.s32.totalorder %s1152_s17, %s1148_s16  ;;  %p56_p2 = scmp.eq.s32.totalorder %s1164_s20, 0 }
  0x11   : > { %p61_p3 = scmp.ne.s32.totalorder %s1148_s16, %s1144_s15  ;;  %s1460_s23 = smov (%p41_p0, %s39_s23), 0 }
  0x12   : > { %1441 = sst [smem:[#allocation18_spill]] %s1460_s23  ;;  %p1238_p4 = por %p56_p2, %p55_p1 }
  0x13   : > { %p62_p5 = scmp.eq.s32.totalorder %s1226_s21, 0  ;;  %s43_s26 = ssub.s32 %s1160_s19, %s1460_s23 }
  0x14   : > { %p139_p6 = scmp.eq.s32.totalorder %s1226_s21, 1  ;;  %p46_p7 = scmp.eq.s32.totalorder %s43_s26, 0 }
  0x15   : > { %p1246_p8 = por %p62_p5, %p61_p3  ;;  %p145_p10 = scmp.eq.s32.totalorder %s806_s22, 1 }
  0x16   : > { %p1250_p9 = por %p139_p6, %p55_p1  ;;  %p808_p12 = scmp.ge.s32.totalorder %s1164_s20, 2 }
  0x17   : > { %s1255_s29 = scalar_select %p46_p7, %s1152_s17, %s48_s24  }
  0x18   : > { %p1257_p11 = por %p145_p10, %p61_p3  ;;  %p886_p13 = scmp.lt.s32.totalorder %s1164_s20, 2 }
  0x19   : > { %1445 = sst [smem:[#allocation19_spill]] %s1255_s29  ;;  %s193_s5 = sand.u32 1, %s1152_s17  }
  0x1a   : > { %s1446_s30 = scalar_select %p1257_p11, 1, 0 }
  0x1b   : > { %s1264_s6 = sshll.u32 %s193_s5, 5  ;;  %s850_s7 = sshll.u32 %s1160_s19, 5 }
  0x1c   : > { %1447 = sst [smem:[#allocation20_spill]] %s1446_s30  ;;  %p1269_p0 = pnand %p886_p13, %p1238_p4 }
  0x1d   : > { %s218_s9 = sand.u32 1, %s1164_s20   ;;  %s1449_s1 = sld [smem:[#allocation21_spill]] }
  0x1e   : > { %s222_s14 = scalar_lea.vmem [#allocation5], %s1264_s6  ;;  %s219_s24 = scalar_lea.sflag [#allocation6], %s218_s9 }
  0x1f   : > { %s231_s22 = sshll.u32 %s222_s14, 4  ;;  %s1166_s26 = smov 128   ;;  %s232_s22 = int_to_ptr.vmem [resolvable:$true] %s231_s22 }
  0x20   : > { %s1167_s25 = smov 8   ;;  %p821_p1 = scmp.ge.s32.totalorder %s1164_s20, 1 }
  0x21   : > { %p262_p2 = scmp.lt.s32.totalorder %s1164_s20, 3  ;;  %s194_s9 = scalar_lea.sflag [#allocation3], %s193_s5 }
  0x22   : > { %s251_s29 = scalar_lea.hbm %s1428_s2, %s850_s7  ;;  %s245_s20 = scalar_lea.vmem [#allocation7], %s1264_s6 }
  0x23   : > { %s228_s12 = scalar_lea.hbm %s1449_s1, %s850_s7  ;;  %p1282_p3 = pnand %p821_p1, %p262_p2 }
  0x24   : > { %s229_s13 = sshll.u32 %s228_s12, 4  ;;  %s205_s12 = scalar_lea.hbm %s1426_s0, %s850_s7  ;;  %s230_s13 = int_to_ptr.hbm [resolvable:$true] %s229_s13 }
  0x25   : > { %875 = dma.hbm_to_vmem [thread:$0]  (!%p1269_p0), %s230_s13, 512, %s232_s22, %s219_s24, %s1166_s26, %s1166_s26, %s1167_s25  }
  0x26   : > { %s206_s14 = sshll.u32 %s205_s12, 4  ;;  %s197_s1 = scalar_lea.vmem [#allocation2], %s1264_s6  ;;  %s207_s14 = int_to_ptr.hbm [resolvable:$true] %s206_s14 }
  0x27   : > { %s208_s19 = sshll.u32 %s197_s1, 4  ;;  %s252_s17 = sshll.u32 %s251_s29, 4  ;;  %s209_s19 = int_to_ptr.vmem [resolvable:$true] %s208_s19  ;;  %s253_s17 = int_to_ptr.hbm [resolvable:$true] %s252_s17 }
  0x28   : > { %872 = dma.hbm_to_vmem [thread:$0]  (!%p1269_p0), %s207_s14, 512, %s209_s19, %s194_s9, %s1166_s26, %s1166_s26, %s1167_s25  }
  0x29   : > { %s254_s30 = sshll.u32 %s245_s20, 4  ;;  %266 = sbr.rel (%p1282_p3) target bundleno = 599 (0x257), region = 32  ;;  %s255_s30 = int_to_ptr.vmem [resolvable:$true] %s254_s30 }
  0x2a   : > { %878 = dma.hbm_to_vmem [thread:$0]  (!%p1269_p0), %s253_s17, 512, %s255_s30, %s219_s24, %s1166_s26, %s1166_s26, %s1167_s25  }
  0x2b   : > { %s1301_s1 = sand.u32 (!%p1282_p3), 1, %s1148_s16  }
  0x2c   : > { %s1304_s19 = sshll.u32 (!%p1282_p3), %s1301_s1, 5  ;;  %s269_s5 = scalar_lea.sflag (!%p1282_p3), [#allocation3], %s1301_s1 }
  0x2d   : > { %s272_s29 = scalar_lea.vmem (!%p1282_p3), [#allocation2], %s1304_s19 }
  0x2e   : > { %1127 = dma.done.wait (%p1246_p8), %s269_s5, 512  }
  0x2f   : > { %1129 = vsyncadd (%p1246_p8), %s269_s5, 4294966784  ;;  %s278_s17 = sand.u32 1, %s1226_s21   ;;  %s282_s23 = scalar_lea.vmem [#allocation5], %s1304_s19 }
  0x30   : > { %s279_s20 = scalar_lea.sflag [#allocation6], %s278_s17 }
  0x31   : > { %1131 = dma.done.wait (%p1246_p8), %s279_s20, 1024  }
  0x32   : > { %1133 = vsyncadd (%p1246_p8), %s279_s20, 4294966272  ;;  %vm357_vm0 = vcmask 261120   ;;  %v350_v0 = vld [vmem:[%s282_s23 + $0x8] sm:$0xff]  ;;  %v341_v1 = vld [vmem:[%s272_s29] sm:$0xff]  ;;  %vm428_vm1 = vcmask 130048   ;;  %s292_s21 = scalar_lea.vmem [#allocation7], %s1304_s19 }
  0x33   : > { %827 = vmatpush.xpose.msk.msra.mxu0 %vm357_vm0, %v350_v0  ;;  %v352_v2 = vld [vmem:[%s282_s23 + $0x18] sm:$0xff]  ;;  %v349_v3 = vld [vmem:[%s282_s23] sm:$0xff]  ;;  %v343_v4 = vld [vmem:[%s272_s29 + $0x10] sm:$0xff]  ;;  %v345_v6 = vmul.f32 0.17677669, %v341_v1  ;;  %s1345_s27 = scalar_lea.vmem [#allocation9], %s1304_s19 }
  0x34   : > { %831 = vmatpush.xpose.msk.msra.mxu1 %vm357_vm0, %v352_v2  ;;  %v351_v5 = vld [vmem:[%s282_s23 + $0x10] sm:$0xff]  ;;  %v347_v7 = vmul.f32 0.17677669, %v343_v4  ;;  %v342_v8 = vld [vmem:[%s272_s29 + $0x8] sm:$0xff]  ;;  %v344_v9 = vld [vmem:[%s272_s29 + $0x18] sm:$0xff]  ;;  %s856_s30 = sshll.u32 %s1156_s18, 5 }
  0x35   : > { %v346_v10 = vmul.f32 0.17677669, %v342_v8  ;;  %v348_v11 = vmul.f32 0.17677669, %v344_v9  ;;  %v354_v40 = vld [vmem:[%s292_s21 + $0x8] sm:$0xff]  ;;  %v353_v41 = vld [vmem:[%s292_s21] sm:$0xff]  ;;  %s635_s24 = scalar_lea.hbm %s1430_s4, %s856_s30 }
  0x36   : > { %553 = vmatpush.msra.mxu2 %v354_v40  ;;  %v356_v42 = vld [vmem:[%s292_s21 + $0x18] sm:$0xff]  ;;  %v355_v43 = vld [vmem:[%s292_s21 + $0x10] sm:$0xff]  ;;  %s636_s6 = sshll.u32 %s1345_s27, 4  ;;  %s638_s26 = sshll.u32 %s635_s24, 4  ;;  %s637_s6 = int_to_ptr.vmem [resolvable:$true] %s636_s6  ;;  %s639_s26 = int_to_ptr.hbm [resolvable:$true] %s638_s26 }
  0x37   : > { %828 = vmatpush.xpose.msk.msra.mxu0 %vm357_vm0, %v349_v3  ;;  %582 = vmatpush.msra.mxu3 %v356_v42  ;;  %s601_s25 = scalar_lea.sflag [#allocation10], %s1301_s1  ;;  %s1060_s10 = sshra.s32 %s639_s26, 4  ;;  %s1061_s10 = int_to_ptr.hbm [resolvable:$true] %s1060_s10 }
  0x38   : > { %832 = vmatpush.xpose.msk.msra.mxu1 %vm357_vm0, %v351_v5  ;;  %554 = vmatpush.msra.mxu2 %v353_v41  ;;  %s1062_s11 = scalar_lea.hbm %s1061_s10, 32  ;;  %s1066_s18 = scalar_lea.hbm %s1430_s4, 64 }
  0x39   : > { %583 = vmatpush.msra.mxu3 %v355_v43  ;;  %p1063_p4 = scmp.ne.s32.totalorder %s1061_s10, %s1062_s11  ;;  %p1067_p7 = scmp.lt.s32.totalorder %s1061_s10, %s1430_s4 }
  0x3a   : > { %829 = vmatmul.msk.f32.vlgmr.msra.gmra.mxu0 %vm357_vm0, %v345_v6  ;;  %p1068_p8 = scmp.lt.s32.totalorder %s1066_s18, %s1062_s11 }
  0x3b   : > { %833 = vmatmul.msk.f32.vlgmr.msra.gmra.mxu1 %vm357_vm0, %v347_v7  ;;  %p1064_p5 = pnand %p1063_p4, %p1250_p9 }
  0x3c   : > { %p1069_p10 = por %p1068_p8, %p1067_p7 }
  0x3d   : > { %p1065_p6 = pneg %p1064_p5 }
  0x3f   : > { %p1070_p13 = pnand %p1069_p10, %p1065_p6 }
  0x42   : > { %830 = vmatmul.msk.f32.gmra.mxu0 %vm357_vm0, %v346_v10 }
  0x43   : > { %834 = vmatmul.msk.f32.gmra.mxu1 %vm357_vm0, %v348_v11 }
  0xb7   : > { %v387_v12 = vpop.f32.mrf.mxu0 }
  0xb8   : > { %v429_v13 = vsel %vm428_vm1, %v387_v12, -inf  ;;  %v422_v14 = vpop.f32.mrf.mxu1 }
  0xb9   : > { %430 = vmax.xlane.f32.xlu0 %v429_v13  ;;  %v435_v15 = vsel %vm428_vm1, %v422_v14, -inf }
  0xbf   : > { %v390_v16 = vpop.f32.mrf.mxu0 }
  0xc0   : > { %v432_v17 = vsel %vm428_vm1, %v390_v16, -inf  ;;  %v425_v18 = vpop.f32.mrf.mxu1 }
  0xc1   : > { %436 = vmax.xlane.f32.xlu0 %v435_v15  ;;  %433 = vmax.xlane.f32.xlu1 %v432_v17  ;;  %v438_v19 = vsel %vm428_vm1, %v425_v18, -inf }
  0xc9   : > { %439 = vmax.xlane.f32.xlu1 %v438_v19 }
 0x12c   : > { %v431_v20 = vpop.xlane.xlu0 %430 }
 0x12d   : > { %v441_v21 = vsub.f32 %v387_v12, %v431_v20 }
 0x12f   : > { %v445_v22 = vmul.f32 1.442695, %v441_v21 }
 0x131   : > { %940 = vpow2.f32 %v445_v22 }
 0x134   : > { %v437_v23 = vpop.xlane.xlu0 %436  ;;  %v434_v24 = vpop.xlane.xlu1 %433 }
 0x135   : > { %v443_v25 = vsub.f32 %v422_v14, %v437_v23  ;;  %v442_v26 = vsub.f32 %v390_v16, %v434_v24 }
 0x137   : > { %v941_v27 = vpop.eup %940  ;;  %v449_v28 = vmul.f32 1.442695, %v443_v25  ;;  %v447_v29 = vmul.f32 1.442695, %v442_v26 }
 0x138   : > { %v453_v30 = vsel %vm428_vm1, %v941_v27, 0.0 }
 0x139   : > { %942 = vpow2.f32 %v449_v28  ;;  %454 = vadd.xlane.f32.xlu2 %v453_v30 }
 0x13a   : > { %944 = vpow2.f32 %v447_v29 }
 0x13c   : > { %v440_v31 = vpop.xlane.xlu1 %439 }
 0x13d   : > { %v444_v32 = vsub.f32 %v425_v18, %v440_v31 }
 0x13f   : > { %v1331_v33 = vpop.eup %942  ;;  %v451_v34 = vmul.f32 1.442695, %v444_v32 }
 0x140   : > { %v1333_v35 = vpop.eup %944  ;;  %v459_v36 = vsel %vm428_vm1, %v1331_v33, 0.0 }
 0x141   : > { %946 = vpow2.f32 %v451_v34  ;;  %460 = vadd.xlane.f32.xlu2 %v459_v36  ;;  %v456_v37 = vsel %vm428_vm1, %v1333_v35, 0.0 }
 0x142   : > { %457 = vadd.xlane.f32.xlu0 %v456_v37 }
 0x147   : > { %v1339_v38 = vpop.eup %946 }
 0x148   : > { %v462_v39 = vsel %vm428_vm1, %v1339_v38, 0.0 }
 0x149   : > { %463 = vadd.xlane.f32.xlu1 %v462_v39 }
 0x1ac   : > { %v455_v44 = vpop.xlane.xlu2 %454 }
 0x1ad   : > { %948 = vrcp.f32 %v455_v44  ;;  %v476_v51 = vand.u32 2147483648, %v455_v44  ;;  %v474_v52 = vand.u32 2147483647, %v455_v44  ;;  %vm470_vm3 = vweird.f32 %v455_v44 }
 0x1af   : > { %v477_v56 = vor.u32 1.1754944e-38, %v476_v51  ;;  %vm475_vm5 = vcmp.eq.f32.partialorder %v474_v52, 8.507059e+37 }
 0x1b3   : > { %v949_v45 = vpop.eup %948 }
 0x1b4   : > { %v466_v46 = vmul.f32 %v949_v45, %v455_v44  ;;  %v461_v47 = vpop.xlane.xlu2 %460  ;;  %vm471_vm2 = vweird.f32 %v949_v45 }
 0x1b5   : > { %950 = vrcp.f32 %v461_v47  ;;  %v458_v48 = vpop.xlane.xlu0 %457  ;;  %vm472_vm4 = vmor %vm470_vm3, %vm471_vm2  ;;  %v506_v63 = vand.u32 2147483648, %v461_v47  ;;  %v504_v3 = vand.u32 2147483647, %v461_v47  ;;  %vm500_vm8 = vweird.f32 %v461_v47 }
 0x1b6   : > { %v467_v49 = vsub.f32 1.0, %v466_v46  ;;  %952 = vrcp.f32 %v458_v48  ;;  %v491_v4 = vand.u32 2147483648, %v458_v48  ;;  %v489_v6 = vand.u32 2147483647, %v458_v48 }
 0x1b7   : > { %v507_v9 = vor.u32 1.1754944e-38, %v506_v63  ;;  %vm485_vm10 = vweird.f32 %v458_v48  ;;  %vm505_vm11 = vcmp.eq.f32.partialorder %v504_v3, 8.507059e+37 }
 0x1b8   : > { %v468_v50 = vmul.f32 %v949_v45, %v467_v49  ;;  %v492_v11 = vor.u32 1.1754944e-38, %v491_v4  ;;  %vm490_vm13 = vcmp.eq.f32.partialorder %v489_v6, 8.507059e+37 }
 0x1ba   : > { %v469_v53 = vadd.f32 %v949_v45, %v468_v50 }
 0x1bb   : > { %v951_v54 = vpop.eup %950 }
 0x1bc   : > { %v953_v55 = vpop.eup %952  ;;  %v496_v57 = vmul.f32 %v951_v54, %v461_v47  ;;  %v464_v58 = vpop.xlane.xlu1 %463  ;;  %v473_v59 = vsel %vm472_vm4, %v949_v45, %v469_v53  ;;  %vm501_vm6 = vweird.f32 %v951_v54 }
 0x1bd   : > { %v481_v60 = vmul.f32 %v953_v55, %v458_v48  ;;  %954 = vrcp.f32 %v464_v58  ;;  %v478_v62 = vsel %vm475_vm5, %v477_v56, %v473_v59  ;;  %vm486_vm7 = vweird.f32 %v953_v55  ;;  %vm502_vm9 = vmor %vm500_vm8, %vm501_vm6 }
 0x1be   : > { %v497_v61 = vsub.f32 1.0, %v496_v57  ;;  %v525_v1 = vmul.f32 %v941_v27, %v478_v62  ;;  %vm487_vm12 = vmor %vm485_vm10, %vm486_vm7  ;;  %v521_v19 = vand.u32 2147483648, %v464_v58  ;;  %v519_v22 = vand.u32 2147483647, %v464_v58 }
 0x1bf   : > { %v482_v0 = vsub.f32 1.0, %v481_v60  ;;  %vm515_vm15 = vweird.f32 %v464_v58 }
 0x1c0   : > { %v498_v2 = vmul.f32 %v951_v54, %v497_v61  ;;  %529 = vst.msk [vmem:[%s1345_s27] sm:$0xff] %vm428_vm1, %v525_v1  ;;  %835 = vmatmul.msk.f32.vlgmr.msra.gmra.mxu2 %vm428_vm1, %v525_v1  ;;  %v522_v24 = vor.u32 1.1754944e-38, %v521_v19  ;;  %vm520_vm3 = vcmp.eq.f32.partialorder %v519_v22, 8.507059e+37 }
 0x1c1   : > { %v483_v5 = vmul.f32 %v953_v55, %v482_v0 }
 0x1c2   : > { %v499_v7 = vadd.f32 %v951_v54, %v498_v2 }
 0x1c3   : > { %v955_v8 = vpop.eup %954  ;;  %v484_v10 = vadd.f32 %v953_v55, %v483_v5 }
 0x1c4   : > { %v511_v12 = vmul.f32 %v955_v8, %v464_v58  ;;  %v503_v13 = vsel %vm502_vm9, %v951_v54, %v499_v7  ;;  %vm516_vm14 = vweird.f32 %v955_v8 }
 0x1c5   : > { %v488_v14 = vsel %vm487_vm12, %v953_v55, %v484_v10  ;;  %v508_v15 = vsel %vm505_vm11, %v507_v9, %v503_v13  ;;  %vm517_vm2 = vmor %vm515_vm15, %vm516_vm14 }
 0x1c6   : > { %v512_v16 = vsub.f32 1.0, %v511_v12  ;;  %v493_v17 = vsel %vm490_vm13, %v492_v11, %v488_v14  ;;  %v527_v18 = vmul.f32 %v1331_v33, %v508_v15 }
 0x1c7   : > { %v526_v20 = vmul.f32 %v1333_v35, %v493_v17 }
 0x1c8   : > { %v513_v21 = vmul.f32 %v955_v8, %v512_v16  ;;  %531 = vst.msk [vmem:[%s1345_s27 + $0x10] sm:$0xff] %vm428_vm1, %v527_v18  ;;  %837 = vmatmul.msk.f32.vlgmr.msra.gmra.mxu3 %vm428_vm1, %v527_v18 }
 0x1c9   : > { %530 = vst.msk [vmem:[%s1345_s27 + $0x8] sm:$0xff] %vm428_vm1, %v526_v20  ;;  %836 = vmatmul.msk.f32.gmra.mxu2 %vm428_vm1, %v526_v20 }
 0x1ca   : > { %v514_v23 = vadd.f32 %v955_v8, %v513_v21 }
 0x1cc   : > { %v518_v25 = vsel %vm517_vm2, %v955_v8, %v514_v23 }
 0x1cd   : > { %v523_v26 = vsel %vm520_vm3, %v522_v24, %v518_v25 }
 0x1ce   : > { %v528_v27 = vmul.f32 %v1339_v38, %v523_v26 }
 0x1d0   : > { %532 = vst.msk [vmem:[%s1345_s27 + $0x18] sm:$0xff] %vm428_vm1, %v528_v27  ;;  %838 = vmatmul.msk.f32.gmra.mxu3 %vm428_vm1, %v528_v27 }
 0x1d1   : > { %1073 = shalt.err (!%p1070_p13)
}
 0x1d2   : > { %s1168_s22 = smov 128   ;;  %s1169_s5 = smov 8  }
 0x1d3   : > { %866 = dma.vmem_to_hbm [thread:$0]  (%p1250_p9), %s637_s6, 512, %s639_s26, %s601_s25, %s1168_s22, %s1168_s22, %s1169_s5  }
 0x1d4   : > { %s325_s29 = scalar_lea.vmem [#allocation8], %s1304_s19  ;;  %s615_s23 = scalar_lea.hbm %s1429_s3, %s856_s30 }
 0x1d5   : > { %s616_s21 = sshll.u32 %s325_s29, 4  ;;  %s618_s27 = sshll.u32 %s615_s23, 4  ;;  %s617_s21 = int_to_ptr.vmem [resolvable:$true] %s616_s21  ;;  %s619_s27 = int_to_ptr.hbm [resolvable:$true] %s618_s27 }
 0x1d6   : > { %s596_s19 = scalar_lea.sflag [#allocation4], %s1301_s1  ;;  %s1088_s6 = sshra.s32 %s619_s27, 4  ;;  %s1089_s6 = int_to_ptr.hbm [resolvable:$true] %s1088_s6 }
 0x1d7   : > { %s1090_s7 = scalar_lea.hbm %s1089_s6, 32  ;;  %s1094_s30 = scalar_lea.hbm %s1429_s3, 64 }
 0x1d8   : > { %p1091_p0 = scmp.ne.s32.totalorder %s1089_s6, %s1090_s7  ;;  %p1095_p3 = scmp.lt.s32.totalorder %s1089_s6, %s1429_s3 }
 0x1d9   : > { %p1096_p4 = scmp.lt.s32.totalorder %s1094_s30, %s1090_s7 }
 0x1da   : > { %p1092_p1 = pnand %p1091_p0, %p1250_p9 }
 0x1db   : > { %p1097_p5 = por %p1096_p4, %p1095_p3 }
 0x1dc   : > { %p1093_p2 = pneg %p1092_p1 }
 0x1de   : > { %p1098_p6 = pnand %p1097_p5, %p1093_p2 }
 0x243   : > { %v556_v28 = vpop.f32.mrf.mxu2 }
 0x244   : > { %591 = vst.msk [vmem:[%s325_s29] sm:$0xff] %vm357_vm0, %v556_v28 }
 0x24b   : > { %v585_v29 = vpop.f32.mrf.mxu3 }
 0x24c   : > { %v559_v30 = vpop.f32.mrf.mxu2  ;;  %593 = vst.msk [vmem:[%s325_s29 + $0x10] sm:$0xff] %vm357_vm0, %v585_v29 }
 0x24d   : > { %592 = vst.msk [vmem:[%s325_s29 + $0x8] sm:$0xff] %vm357_vm0, %v559_v30 }
 0x253   : > { %v588_v31 = vpop.f32.mrf.mxu3 }
 0x254   : > { %594 = vst.msk [vmem:[%s325_s29 + $0x18] sm:$0xff] %vm357_vm0, %v588_v31 }
 0x255   : > { %1101 = shalt.err (!%p1098_p6)
}
 0x256   : > { %865 = dma.vmem_to_hbm [thread:$0]  (%p1250_p9), %s617_s21, 512, %s619_s27, %s596_s19, %s1168_s22, %s1168_s22, %s1169_s5  }
 0x257 PF: > { %s1452_s10 = sld [smem:[#allocation17_spill]]  ;;  %s653_s11 = sand.u32 1, %s1144_s15  }
 0x258   : > { %p880_p7 = pnand %p808_p12, %p1257_p11  ;;  %s654_s12 = scalar_lea.sflag [#allocation4], %s653_s11 }
 0x25a   : > { %p881_p8 = pneg %p880_p7 }
 0x25c   : > { %1135 = dma.done.wait (%p881_p8), %s654_s12, 512  }
 0x25d   : > { %1137 = vsyncadd (%p881_p8), %s654_s12, 4294966784  ;;  %s664_s14 = scalar_lea.sflag [#allocation10], %s653_s11 }
 0x25e   : > { %1139 = dma.done.wait (%p881_p8), %s664_s14, 512  }
 0x25f   : > { %1141 = vsyncadd (%p881_p8), %s664_s14, 4294966784  ;;  %s27_s20 = sadd.s32 1, %s1452_s10   ;;  %s1453_s28 = sld [smem:[#allocation15_spill]] }
 0x260   : > { %p24_p10 = scmp.ge.s32.totalorder %s27_s20, 4   ;;  %s1454_s17 = sld [smem:[#allocation19_spill]] }
 0x261   : > { %s1455_s18 = sld [smem:[#allocation16_spill]]  ;;  %s1457_s15 = smov %s1148_s16 }
 0x262   : > { %s1456_s19 = sld [smem:[#allocation18_spill]]  ;;  %26 = sbr.rel (!%p24_p10) target bundleno = 12 (0xc), region = 118 }
 0x265   : > { %s1458_s16 = smov %s1453_s28 }
 0x267   :  { %670 = vsyncpa [#allocation3], 1 }
 0x268   :  { %672 = vsyncpa [#allocation3 + $0x1], 1 }
 0x269   :  { %673 = vsyncpa [#allocation6], 1 }
 0x26a   :  { %675 = vsyncpa [#allocation6 + $0x1], 1 }
 0x26b   :  { %676 = vsyncpa [#allocation4], 1 }
 0x26c   :  { %678 = vsyncpa [#allocation4 + $0x1], 1 }
 0x26d   :  { %679 = vsyncpa [#allocation10], 1 }
 0x26e   :  { %681 = vsyncpa [#allocation10 + $0x1], 1 }

</bundles_post_ra>
